<compile_context>
chip_gen: v6e
topology: v6e:2x2x1
jax: 0.10.0
libtpu: 0.0.40
codegen_flags: <defaults>
</compile_context>

<pallas_src>
import jax
import jax.numpy as jnp
from jax.experimental import pallas as pl
from jax.experimental.pallas import tpu as pltpu


def _round_up(x, m):
    return (x + m - 1) // m * m


def _resblk_kernel(h_ref, w1_ref, b1_ref, w2_ref, b2_ref, out_ref):
    # fc1: single lane-dense K (noise|att packed by the wrapper) -> one MXU matmul.
    z1 = jnp.dot(h_ref[...], w1_ref[...],
                 preferred_element_type=jnp.float32) + b1_ref[...]
    a1 = jnp.maximum(z1, 0.2 * z1)          # LeakyReLU(0.2) in f32 on the VPU
    # fc2 (bf16 operands, f32 accumulation) + LeakyReLU(0.2)
    z2 = jnp.dot(a1.astype(jnp.bfloat16), w2_ref[...],
                 preferred_element_type=jnp.float32) + b2_ref[...]
    out_ref[...] = jnp.maximum(z2, 0.2 * z2).astype(out_ref.dtype)


def _pad2d(x, rows, cols, dtype):
    """Zero-pad a 2-D array to (rows, cols) and cast to dtype."""
    if x.shape == (rows, cols) and x.dtype == dtype:
        return x
    return jnp.zeros((rows, cols), dtype).at[: x.shape[0], : x.shape[1]].set(
        x.astype(dtype))


def init_resblk_params(key, att_size, nz, ngh):
    """weights_init: W ~ N(0, 0.02), b = 0. Stored as [in, out] (= torch W.T)."""
    k1, k2 = jax.random.split(key)
    in_dim = nz + att_size
    w1 = 0.02 * jax.random.normal(k1, (in_dim, ngh), dtype=jnp.float32)
    b1 = jnp.zeros((ngh,), dtype=jnp.float32)
    w2 = 0.02 * jax.random.normal(k2, (ngh, ngh), dtype=jnp.float32)
    b2 = jnp.zeros((ngh,), dtype=jnp.float32)

    # Lane-dense bf16 copies, padded ONCE at init. w1 kept MERGED so the fc1
    # padded K is round_up(nz+att, 128), not round_up(nz,128)+round_up(att,128).
    in_pad = _round_up(in_dim, 128)
    ngh_pad = _round_up(ngh, 128)
    return {
        # f32, unpadded (reference / checkpoint compatibility)
        "w1": w1, "b1": b1, "w2": w2, "b2": b2,
        # bf16/f32 padded kernel operands
        "w1_p": _pad2d(w1, in_pad, ngh_pad, jnp.bfloat16),
        "w2_p": _pad2d(w2, ngh_pad, ngh_pad, jnp.bfloat16),
        "b1_p": _pad2d(b1[None, :], 1, ngh_pad, jnp.float32),
        "b2_p": _pad2d(b2[None, :], 1, ngh_pad, jnp.float32),
        "dims": (nz, att_size, ngh),
    }


def _const_spec(shape):
    """Grid-invariant operand: fetched once, single-buffered (halves its VMEM)."""
    try:
        return pl.BlockSpec(shape, lambda i: (0, 0), pipeline_mode=pl.Buffered(1))
    except TypeError:   # older jax without pipeline_mode support
        return pl.BlockSpec(shape, lambda i: (0, 0))


def _vmem_limit_bytes():
    """Chip-aware cap: ~3/4 of physical VMEM (64 MiB v7x, 128 MiB v5e/v6e)."""
    try:
        cap = pltpu.get_tpu_info().vmem_capacity_bytes
    except Exception:
        cap = 64 * 1024 * 1024
    return min(int(cap * 3 // 4), 100 * 1024 * 1024)


def resblk_forward(noise, att, params):
    """Pallas implementation of ResBlk.forward(noise, att)."""
    nz, att_size, ngh = params["dims"]
    B = att.shape[0]
    assert noise.shape[0] >= B, "noise must have at least att.shape[0] rows"
    noise = noise[:B, :]                       # noise = noise[:att.shape[0], :]

    in_dim = nz + att_size
    in_pad = params["w1_p"].shape[0]
    ngh_pad = params["w2_p"].shape[1]

    # Batch tile: up to 512 rows/grid step (better HBM roofline, fewer per-step
    # overheads), 16-row aligned (bf16 packs 2 rows per sublane), and >=2 grid
    # steps whenever B > 16 so the "parallel" axis can be split across v7x's
    # two TensorCores.
    tm = min(512, _round_up((B + 1) // 2, 16))
    B_pad = _round_up(B, tm)

    # Fuse torch.cat into the one padding op we pay for anyway: a single
    # lane-dense bf16 LHS holding [noise | att | 0-pad].
    h_pd = (jnp.zeros((B_pad, in_pad), jnp.bfloat16)
            .at[:B, :nz].set(noise.astype(jnp.bfloat16))
            .at[:B, nz:in_dim].set(att.astype(jnp.bfloat16)))

    # TODO(synk): for very large ngh (bf16 w2 > ~24 MiB on v7x / ~48 MiB on
    # v5e/v6e) add a K/N-tiled fc2 path (extra "arbitrary" grid axis + VMEM
    # accumulator scratch) instead of keeping the whole w2 VMEM-resident.
    out_pd = pl.pallas_call(
        _resblk_kernel,
        out_shape=jax.ShapeDtypeStruct((B_pad, ngh_pad), jnp.float32),
        grid=(B_pad // tm,),
        in_specs=[
            pl.BlockSpec((tm, in_pad), lambda i: (i, 0)),     # packed [noise|att]
            _const_spec((in_pad, ngh_pad)),                   # w1 (merged)
            _const_spec((1, ngh_pad)),                        # b1
            _const_spec((ngh_pad, ngh_pad)),                  # w2
            _const_spec((1, ngh_pad)),                        # b2
        ],
        out_specs=pl.BlockSpec((tm, ngh_pad), lambda i: (i, 0)),
        compiler_params=pltpu.CompilerParams(
            dimension_semantics=("parallel",),
            vmem_limit_bytes=_vmem_limit_bytes(),
        ),
    )(h_pd, params["w1_p"], params["b1_p"], params["w2_p"], params["b2_p"])

    # NOTE: consumers that tolerate bf16 / padded layouts should take out_pd
    # directly (skips this extra HBM pass over the output).
    return out_pd[:B, :ngh]


def resblk_reference(noise, att, params):
    """Plain-JAX f32 reference for correctness check."""
    noise = noise[: att.shape[0], :]
    h = jnp.concatenate([noise, att], axis=1)
    z1 = h @ params["w1"] + params["b1"]
    a1 = jnp.where(z1 > 0, z1, 0.2 * z1)
    z2 = a1 @ params["w2"] + params["b2"]
    return jnp.where(z2 > 0, z2, 0.2 * z2)


if __name__ == "__main__":
    # Small shapes implied by the forward: opt.attSize=16, opt.nz=16, opt.ngh=32.
    att_size, nz, ngh = 16, 16, 32
    batch = 2

    key = jax.random.PRNGKey(0)
    k_params, k_noise, k_att = jax.random.split(key, 3)

    params = init_resblk_params(k_params, att_size, nz, ngh)
    # noise may have more rows than att; forward slices it to att.shape[0].
    noise = jax.random.normal(k_noise, (batch + 2, nz), dtype=jnp.float32)
    att = jax.random.normal(k_att, (batch, att_size), dtype=jnp.float32)

    out = jax.block_until_ready(resblk_forward(noise, att, params))
    ref = resblk_reference(noise, att, params)

    assert out.shape == (batch, ngh)
    # bf16 MXU operands -> compare against the f32 reference at bf16 precision.
    assert jnp.allclose(out, ref, atol=5e-3, rtol=5e-2), "mismatch vs reference"

    print("KERNEL_OK")
</pallas_src>

<mosaic_0001>
module attributes {stable_mosaic.version = 11 : i64} {
  func.func @_resblk_kernel(%arg0: i32, %arg1: memref<16x128xbf16, #tpu.memory_space<vmem>>, %arg2: memref<128x128xbf16, #tpu.memory_space<vmem>>, %arg3: memref<1x128xf32, #tpu.memory_space<vmem>>, %arg4: memref<128x128xbf16, #tpu.memory_space<vmem>>, %arg5: memref<1x128xf32, #tpu.memory_space<vmem>>, %arg6: memref<16x128xf32, #tpu.memory_space<vmem>>) attributes {dimension_semantics = [#tpu.dimension_semantics<parallel>], iteration_bounds = array<i64: 1>, scalar_prefetch = 0 : i64, scratch_operands = 0 : i64, tpu.core_type = #tpu.core_type<tc>, window_params = [{transform_indices = @transform_0, window_bounds = array<i64: 16, 128>}, {pipeline_mode = #tpu.pipeline_mode<synchronous>, transform_indices = @transform_1, window_bounds = array<i64: 128, 128>}, {pipeline_mode = #tpu.pipeline_mode<synchronous>, transform_indices = @transform_2, window_bounds = array<i64: 1, 128>}, {pipeline_mode = #tpu.pipeline_mode<synchronous>, transform_indices = @transform_3, window_bounds = array<i64: 128, 128>}, {pipeline_mode = #tpu.pipeline_mode<synchronous>, transform_indices = @transform_4, window_bounds = array<i64: 1, 128>}, {transform_indices = @transform_5, window_bounds = array<i64: 16, 128>}]} {
    %c0 = arith.constant 0 : index
    %c0_0 = arith.constant 0 : index
    %0 = vector.load %arg1[%c0, %c0_0] : memref<16x128xbf16, #tpu.memory_space<vmem>>, vector<16x128xbf16>
    %c0_1 = arith.constant 0 : index
    %c0_2 = arith.constant 0 : index
    %1 = vector.load %arg2[%c0_1, %c0_2] : memref<128x128xbf16, #tpu.memory_space<vmem>>, vector<128x128xbf16>
    %cst = arith.constant dense<0.000000e+00> : vector<16x128xf32>
    %2 = tpu.matmul %0, %1, %cst {dimension_numbers = #tpu.dot_dimension_numbers<[1], [0], [0], [1], [0, 0, 1, 1], [], []>} : vector<16x128xbf16>, vector<128x128xbf16>, vector<16x128xf32> -> vector<16x128xf32>
    %c0_3 = arith.constant 0 : index
    %c0_4 = arith.constant 0 : index
    %3 = vector.load %arg3[%c0_3, %c0_4] : memref<1x128xf32, #tpu.memory_space<vmem>>, vector<1x128xf32>
    %4 = vector.broadcast %3 : vector<1x128xf32> to vector<16x128xf32>
    %5 = arith.addf %2, %4 : vector<16x128xf32>
    %cst_5 = arith.constant 2.000000e-01 : f32
    %6 = vector.broadcast %cst_5 : f32 to vector<16x128xf32>
    %7 = arith.mulf %6, %5 : vector<16x128xf32>
    %8 = arith.maximumf %5, %7 : vector<16x128xf32>
    %9 = arith.truncf %8 : vector<16x128xf32> to vector<16x128xbf16>
    %c0_6 = arith.constant 0 : index
    %c0_7 = arith.constant 0 : index
    %10 = vector.load %arg4[%c0_6, %c0_7] : memref<128x128xbf16, #tpu.memory_space<vmem>>, vector<128x128xbf16>
    %cst_8 = arith.constant dense<0.000000e+00> : vector<16x128xf32>
    %11 = tpu.matmul %9, %10, %cst_8 {dimension_numbers = #tpu.dot_dimension_numbers<[1], [0], [0], [1], [0, 0, 1, 1], [], []>} : vector<16x128xbf16>, vector<128x128xbf16>, vector<16x128xf32> -> vector<16x128xf32>
    %c0_9 = arith.constant 0 : index
    %c0_10 = arith.constant 0 : index
    %12 = vector.load %arg5[%c0_9, %c0_10] : memref<1x128xf32, #tpu.memory_space<vmem>>, vector<1x128xf32>
    %13 = vector.broadcast %12 : vector<1x128xf32> to vector<16x128xf32>
    %14 = arith.addf %11, %13 : vector<16x128xf32>
    %cst_11 = arith.constant 2.000000e-01 : f32
    %15 = vector.broadcast %cst_11 : f32 to vector<16x128xf32>
    %16 = arith.mulf %15, %14 : vector<16x128xf32>
    %17 = arith.maximumf %14, %16 : vector<16x128xf32>
    %c0_12 = arith.constant 0 : index
    %c0_13 = arith.constant 0 : index
    %18 = vector.load %arg6[%c0_12, %c0_13] : memref<16x128xf32, #tpu.memory_space<vmem>>, vector<16x128xf32>
    tpu.vector_store %arg6[%c0_12, %c0_13], %17 {strides = array<i32>} : memref<16x128xf32, #tpu.memory_space<vmem>>, vector<16x128xf32>,
    return
  }
  func.func @transform_0(%arg0: i32) -> (i32, i32) {
    %c0_i32 = arith.constant 0 : i32
    %c0_i32_0 = arith.constant 0 : i32
    return %arg0, %c0_i32 : i32, i32
  }
  func.func @transform_1(%arg0: i32) -> (i32, i32) {
    %c0_i32 = arith.constant 0 : i32
    %c0_i32_0 = arith.constant 0 : i32
    %c0_i32_1 = arith.constant 0 : i32
    return %c0_i32, %c0_i32_0 : i32, i32
  }
  func.func @transform_2(%arg0: i32) -> (i32, i32) {
    %c0_i32 = arith.constant 0 : i32
    %c0_i32_0 = arith.constant 0 : i32
    %c0_i32_1 = arith.constant 0 : i32
    return %c0_i32, %c0_i32_0 : i32, i32
  }
  func.func @transform_3(%arg0: i32) -> (i32, i32) {
    %c0_i32 = arith.constant 0 : i32
    %c0_i32_0 = arith.constant 0 : i32
    %c0_i32_1 = arith.constant 0 : i32
    return %c0_i32, %c0_i32_0 : i32, i32
  }
  func.func @transform_4(%arg0: i32) -> (i32, i32) {
    %c0_i32 = arith.constant 0 : i32
    %c0_i32_0 = arith.constant 0 : i32
    %c0_i32_1 = arith.constant 0 : i32
    return %c0_i32, %c0_i32_0 : i32, i32
  }
  func.func @transform_5(%arg0: i32) -> (i32, i32) {
    %c0_i32 = arith.constant 0 : i32
    %c0_i32_0 = arith.constant 0 : i32
    return %arg0, %c0_i32 : i32, i32
  }
}

</mosaic_0001>

<bundles_post_ra>
// kernel: tpu_custom_call.1
= control target key start
LH: loop header
LB: loop body
LE: loop exit
PB: predicated region body
PF: predicated region fallthrough
CT: control target
= control target key end

     0   :  { %10 = vsyncpa [#allocation3], 0  ;;  %s572_s0 = inlined_call_operand.hbm [shape: bf16[16,128], index: 0, kind: input, shape index: {}]   ;;  %s573_s1 = inlined_call_operand.hbm [shape: bf16[128,128], index: 1, kind: input, shape index: {}]   ;;  %s574_s2 = inlined_call_operand.vmem [shape: f32[1,128], index: 2, kind: input, shape index: {}]   ;;  %s575_s3 = inlined_call_operand.hbm [shape: bf16[128,128], index: 3, kind: input, shape index: {}]   ;;  %s576_s4 = inlined_call_operand.vmem [shape: f32[1,128], index: 4, kind: input, shape index: {}]   ;;  %s577_s5 = inlined_call_operand.hbm [shape: f32[16,128], index: 5, kind: output, shape index: {}]  }
   0x1   :  { %11 = vsyncpa [#allocation6], 0 }
   0x2   :  { %12 = vsyncpa [#allocation4], 0  ;;  %s514_s18 = smov [#allocation5]   ;;  %s515_s20 = smov [#allocation2]  }
   0x3   :  { %s30_s19 = sshll.u32 %s514_s18, 4  ;;  %s18_s21 = sshll.u32 %s515_s20, 4  ;;  %s31_s19 = int_to_ptr.vmem [resolvable:$true] %s30_s19  ;;  %s19_s21 = int_to_ptr.vmem [resolvable:$true] %s18_s21 }
   0x4   :  { %s436_s22 = scalar_lea.vmem %s31_s19, 1024  ;;  %p441_p1 = scmp.lt.s32.totalorder %s31_s19, %s31_s19 }
   0x5   :  { %p437_p0 = scmp.ne.s32.totalorder %s31_s19, %s436_s22  ;;  %p442_p2 = scmp.lt.s32.totalorder %s436_s22, %s436_s22 }
   0x7   :  { %p443_p3 = por %p442_p2, %p441_p1 }
   0x9   :  { %p444_p4 = pnand %p443_p3, %p437_p0 }
   0xb   :  { %447 = shalt.err (!%p444_p4)
}
   0xc   :  { %s516_s23 = smov 64   ;;  %s517_s24 = smov 4  }
   0xd   :  { %36 = dma.hbm_to_vmem [thread:$0]  %s573_s1, 1024, %s31_s19, [#allocation6], %s516_s23, %s516_s23, %s517_s24  }
   0xe   :  { %s456_s27 = scalar_lea.vmem %s19_s21, 128  ;;  %p461_p6 = scmp.lt.s32.totalorder %s19_s21, %s19_s21 }
   0xf   :  { %p457_p5 = scmp.ne.s32.totalorder %s19_s21, %s456_s27  ;;  %p462_p7 = scmp.lt.s32.totalorder %s456_s27, %s456_s27 }
  0x11   :  { %p463_p8 = por %p462_p7, %p461_p6 }
  0x13   :  { %p464_p9 = pnand %p463_p8, %p457_p5 }
  0x15   :  { %467 = shalt.err (!%p464_p9)
}
  0x16   :  { %24 = dma.hbm_to_vmem [thread:$0]  %s572_s0, 128, %s19_s21, [#allocation3], %s516_s23, %s516_s23, %s517_s24  }
  0x17   :  { %s518_s30 = smov [#allocation7]  }
  0x18   :  { %s44_s6 = sshll.u32 %s518_s30, 4  ;;  %s45_s6 = int_to_ptr.vmem [resolvable:$true] %s44_s6 }
  0x19   :  { %s476_s7 = scalar_lea.vmem %s45_s6, 1024  ;;  %p481_p11 = scmp.lt.s32.totalorder %s45_s6, %s45_s6 }
  0x1a   :  { %p477_p10 = scmp.ne.s32.totalorder %s45_s6, %s476_s7  ;;  %p482_p12 = scmp.lt.s32.totalorder %s476_s7, %s476_s7 }
  0x1c   :  { %p483_p13 = por %p482_p12, %p481_p11 }
  0x1e   :  { %p484_p0 = pnand %p483_p13, %p477_p10 }
  0x20   :  { %487 = shalt.err (!%p484_p0)
}
  0x21   :  { %50 = dma.hbm_to_vmem [thread:$0]  %s575_s3, 1024, %s45_s6, [#allocation6], %s516_s23, %s516_s23, %s517_s24  }
  0x22   :  { %508 = dma.done.wait [#allocation3], 128  }
  0x23   :  { %509 = vsyncadd [#allocation3], 4294967168 }
  0x24   :  { %510 = dma.done.wait [#allocation6], 2048  }
  0x25   :  { %511 = vsyncadd [#allocation6], 4294965248  ;;  %v519_v0 = vmov 0.0   ;;  %vm520_vm0 = vmmov 0   ;;  %v411_v1 = vld [vmem:[#allocation5 + $0x38] sm:$0xff]   ;;  %v412_v2 = vld [vmem:[#allocation5 + $0x30] sm:$0xff]  }
  0x26   :  { %361 = vmatprep.subr.bf16.mxu0 %v519_v0  ;;  %377 = vmatprep.mubr.msk.bf16.mxu0 %vm520_vm0, %v519_v0  ;;  %v413_v3 = vld [vmem:[#allocation5 + $0x28] sm:$0xff]   ;;  %v420_v4 = vld [vmem:[#allocation7 + $0x38] sm:$0xff]   ;;  %v414_v5 = vld [vmem:[#allocation5 + $0x20] sm:$0xff]  }
  0x27   :  { %381 = vmatprep.subr.bf16.mxu1 %v519_v0  ;;  %397 = vmatprep.mubr.msk.bf16.mxu1 %vm520_vm0, %v519_v0  ;;  %v421_v6 = vld [vmem:[#allocation7 + $0x30] sm:$0xff]   ;;  %v415_v7 = vld [vmem:[#allocation5 + $0x18] sm:$0xff]   ;;  %v422_v8 = vld [vmem:[#allocation7 + $0x28] sm:$0xff]  }
  0x28   :  { %362 = vmatpush3.bf16.msra.mxu0 %v411_v1  ;;  %382 = vmatpush3.bf16.msra.mxu1 %v420_v4  ;;  %v416_v9 = vld [vmem:[#allocation5 + $0x10] sm:$0xff]   ;;  %v423_v10 = vld [vmem:[#allocation7 + $0x20] sm:$0xff]   ;;  %v417_v11 = vld [vmem:[#allocation5 + $0x8] sm:$0xff]  }
  0x29   :  { %363 = vmatprep.subr.bf16.mxu0 %v519_v0  ;;  %383 = vmatprep.subr.bf16.mxu1 %v519_v0  ;;  %v424_v12 = vld [vmem:[#allocation7 + $0x18] sm:$0xff]   ;;  %v418_v13 = vld [vmem:[#allocation5] sm:$0xff]   ;;  %v425_v15 = vld [vmem:[#allocation7 + $0x10] sm:$0xff]  }
  0x2a   :  { %v419_v14 = vld [vmem:[#allocation2] sm:$0xff]   ;;  %v426_v16 = vld [vmem:[#allocation7 + $0x8] sm:$0xff]   ;;  %v427_v17 = vld [vmem:[#allocation7] sm:$0xff]  }
  0x2b   :  { %v324_v18 = vld [vmem:[%s574_s2] ss:$0 sm:$0xff]  ;;  %s521_s2 = smov [#allocation8]  }
  0x2c   :  { %364 = vmatpush3.bf16.msra.mxu0 %v412_v2  ;;  %384 = vmatpush3.bf16.msra.mxu1 %v421_v6  ;;  %v334_v30 = vld [vmem:[%s576_s4] ss:$0 sm:$0xff]  ;;  %s311_s11 = sshll.u32 %s521_s2, 4  ;;  %s312_s11 = int_to_ptr.vmem [resolvable:$true] %s311_s11 }
  0x2d   :  { %365 = vmatprep.subr.bf16.mxu0 %v519_v0  ;;  %385 = vmatprep.subr.bf16.mxu1 %v519_v0  ;;  %s488_s12 = scalar_lea.vmem %s312_s11, 256  ;;  %p493_p2 = scmp.lt.s32.totalorder %s312_s11, %s312_s11 }
  0x2e   :  { %p489_p1 = scmp.ne.s32.totalorder %s312_s11, %s488_s12  ;;  %p494_p3 = scmp.lt.s32.totalorder %s488_s12, %s488_s12 }
  0x30   :  { %366 = vmatpush3.bf16.msra.mxu0 %v413_v3  ;;  %386 = vmatpush3.bf16.msra.mxu1 %v422_v8  ;;  %p495_p4 = por %p494_p3, %p493_p2 }
  0x31   :  { %367 = vmatprep.subr.bf16.mxu0 %v519_v0  ;;  %387 = vmatprep.subr.bf16.mxu1 %v519_v0 }
  0x32   :  { %p496_p5 = pnand %p495_p4, %p489_p1 }
  0x34   :  { %368 = vmatpush3.bf16.msra.mxu0 %v414_v5  ;;  %388 = vmatpush3.bf16.msra.mxu1 %v423_v10 }
  0x35   :  { %369 = vmatprep.subr.bf16.mxu0 %v519_v0  ;;  %389 = vmatprep.subr.bf16.mxu1 %v519_v0 }
  0x38   :  { %370 = vmatpush3.bf16.msra.mxu0 %v415_v7  ;;  %390 = vmatpush3.bf16.msra.mxu1 %v424_v12 }
  0x39   :  { %371 = vmatprep.subr.bf16.mxu0 %v519_v0  ;;  %391 = vmatprep.subr.bf16.mxu1 %v519_v0 }
  0x3c   :  { %372 = vmatpush3.bf16.msra.mxu0 %v416_v9  ;;  %392 = vmatpush3.bf16.msra.mxu1 %v425_v15 }
  0x3d   :  { %373 = vmatprep.subr.bf16.mxu0 %v519_v0  ;;  %393 = vmatprep.subr.bf16.mxu1 %v519_v0 }
  0x40   :  { %374 = vmatpush3.bf16.msra.mxu0 %v417_v11  ;;  %394 = vmatpush3.bf16.msra.mxu1 %v426_v16 }
  0x41   :  { %375 = vmatprep.subr.bf16.mxu0 %v519_v0  ;;  %395 = vmatprep.subr.bf16.mxu1 %v519_v0 }
  0x44   :  { %376 = vmatpush3.bf16.msra.mxu0 %v418_v13  ;;  %396 = vmatpush3.bf16.msra.mxu1 %v427_v17 }
  0x47   :  { %378 = vmatmul.mubr.bf16.vlgmr.msra.gmra.mxu0 %v419_v14 }
 0x107   :  { %v176_v19 = vpop.f32.mrf.mxu0 }
 0x108   :  { %v177_v20 = vadd.f32 %v324_v18, %v176_v19 }
 0x109   :  { %v379_v21 = vpop.f32.mrf.mxu0 }
 0x10a   :  { %v183_v23 = vmul.f32 0.2, %v177_v20 }
 0x10b   :  { %v179_v22 = vpop.f32.mrf.mxu0 }
 0x10c   :  { %v180_v24 = vadd.f32 %v324_v18, %v179_v22  ;;  %v185_v27 = vmax.f32 %v177_v20, %v183_v23 }
 0x10d   :  { %v380_v25 = vpop.f32.mrf.mxu0 }
 0x10e   :  { %v184_v26 = vmul.f32 0.2, %v180_v24 }
 0x110   :  { %v186_v28 = vmax.f32 %v180_v24, %v184_v26 }
 0x112   :  { %v187_v29 = vpack.c.bf16 %v186_v28, %v185_v27 }
 0x114   :  { %398 = vmatmul.mubr.bf16.vlgmr.msra.gmra.mxu1 %v187_v29 }
 0x1d4   :  { %v293_v31 = vpop.f32.mrf.mxu1 }
 0x1d5   :  { %v294_v32 = vadd.f32 %v334_v30, %v293_v31 }
 0x1d6   :  { %v399_v33 = vpop.f32.mrf.mxu1 }
 0x1d7   :  { %v300_v34 = vmul.f32 0.2, %v294_v32 }
 0x1d8   :  { %v296_v35 = vpop.f32.mrf.mxu1 }
 0x1d9   :  { %v302_v36 = vmax.f32 %v294_v32, %v300_v34  ;;  %v297_v37 = vadd.f32 %v334_v30, %v296_v35 }
 0x1da   :  { %v400_v38 = vpop.f32.mrf.mxu1 }
 0x1db   :  { %304 = vst [vmem:[#allocation8] sm:$0xff] %v302_v36  ;;  %v301_v39 = vmul.f32 0.2, %v297_v37 }
 0x1dd   :  { %v303_v40 = vmax.f32 %v297_v37, %v301_v39 }
 0x1df   :  { %305 = vst [vmem:[#allocation8 + $0x8] sm:$0xff] %v303_v40 }
 0x1e0   :  { %499 = shalt.err (!%p496_p5)
}
 0x1e1   :  { %s522_s4 = smov 128   ;;  %s523_s13 = smov 8  }
 0x1e2   :  { %317 = dma.vmem_to_hbm [thread:$0]  %s312_s11, 256, %s577_s5, [#allocation4], %s522_s4, %s522_s4, %s523_s13  }
 0x1e3   :  { %512 = dma.done.wait [#allocation4], 256  }
 0x1e4   :  { %513 = vsyncadd [#allocation4], 4294967040 }
 0x1e5   :  { %321 = vsyncpa [#allocation3], 1 }
 0x1e6   :  { %322 = vsyncpa [#allocation6], 1 }
 0x1e7   :  { %323 = vsyncpa [#allocation4], 1 }

</bundles_post_ra>
